<compile_context>
chip_gen: v7x
topology: tpu7x:2x2x1
jax: 0.10.0
libtpu: 0.0.40
codegen_flags: <defaults>
</compile_context>

<pallas_src>
import functools

import jax
import jax.numpy as jnp
from jax.experimental import pallas as pl
from jax.experimental.pallas import tpu as pltpu

_LANE = 128     # last-dim tiles must be 128-multiples (or the full dim)
_SUBLANE = 8    # second-to-last-dim tiles must be 8-multiples (or the full dim)


def _round_up(n, m):
    return ((n + m - 1) // m) * m


def _softmax_regression_kernel(x_ref, w_ref, b_ref, o_ref, *, bf16_dot):
    # x_ref: (TB, D)   w_ref: (D, Cp)   b_ref: (1, Cp)   o_ref: (TB, Cp)
    x = x_ref[...]
    w = w_ref[...]
    if bf16_dot:
        # In-kernel cast (VPU work, hides under DMA). Softmax math stays f32
        # (v5e has no bf16 VPU/EUP).
        x = x.astype(jnp.bfloat16)
        w = w.astype(jnp.bfloat16)
        logits = jnp.dot(x, w, preferred_element_type=jnp.float32)
    else:
        # Full-precision f32 matmul so results match the f32 reference.
        logits = jnp.dot(x, w, preferred_element_type=jnp.float32,
                         precision=jax.lax.Precision.HIGHEST)
    logits = logits + b_ref[...]                      # (1, Cp) broadcasts to (TB, Cp)

    # Numerically stable softmax over the last dim. Padded classes carry a
    # -1e30 bias (and zero weight columns), so exp(logit - m) == 0 for them.
    m = jnp.max(logits, axis=-1, keepdims=True)
    e = jnp.exp(logits - m)
    denom = jnp.sum(e, axis=-1, keepdims=True)
    # Exact divide: approx reciprocal's relative error breaks 1e-5 tolerance.
    o_ref[...] = (e / denom).astype(o_ref.dtype)


def _pick_batch_tile(B, D, Cp, batch_tile, out_itemsize):
    """Choose (TB, Bp) s.t. the tile fits VMEM, divides B when possible, and
    leaves >=2 grid programs for v7x when the batch is large enough."""
    # Stay under the v7x scoped VMEM default (32 MiB) with headroom; v5e/v6e
    # have far more so the same choice is safe everywhere.
    budget = 24 * 1024 * 1024
    fixed = 4 * (D * Cp + Cp)                       # single-buffered W + bias (f32)
    per_row = 2 * (4 * D + out_itemsize * Cp)       # double-buffered x tile + out tile
    max_tb = max(_SUBLANE, ((budget - fixed) // per_row) // _SUBLANE * _SUBLANE)

    tb = max(_SUBLANE, (min(batch_tile, max_tb) // _SUBLANE) * _SUBLANE)

    if B % _SUBLANE != 0:
        # Odd batch: a full-extent block needs no padding (block dim == array dim).
        if fixed + B * per_row <= budget:
            return B, B
        return tb, _round_up(B, tb)

    tb = min(tb, _round_up(B, _SUBLANE))
    # Keep at least 2 grid programs when possible (v7x: shard across both TCs).
    if B >= 2 * _SUBLANE:
        tb = min(tb, _round_up((B + 1) // 2, _SUBLANE))
    tb = max(_SUBLANE, tb)

    # Prefer a tile that divides B exactly -> no x padding / output slicing pass.
    t = max(_SUBLANE, (min(tb, B) // _SUBLANE) * _SUBLANE)
    best = _SUBLANE
    while t >= _SUBLANE:
        if B % t == 0:
            best = t
            break
        t -= _SUBLANE
    if best >= max(_SUBLANE, tb // 4):
        return best, B
    # Exact divisor would mean too many tiny grid steps; pad instead.
    return tb, _round_up(B, tb)


def softmax_regression(x, weights, bias, *, batch_tile=512, bf16_dot=False,
                       out_dtype=jnp.float32):
    """Forward pass: softmax(x @ weights + bias, axis=-1)."""
    B, D = x.shape
    D2, C = weights.shape
    assert D == D2 and bias.shape == (C,)

    # ---- lane-dense class axis -------------------------------------------
    Cp = _round_up(max(C, _LANE), _LANE)
    if Cp != C:
        weights = jnp.pad(weights, ((0, 0), (0, Cp - C)))           # zero columns
        bias = jnp.pad(bias, ((0, Cp - C),), constant_values=-1e30)  # softmax weight 0
    bias2d = bias.reshape(1, Cp)

    # ---- batch tiling ------------------------------------------------------
    out_itemsize = jnp.dtype(out_dtype).itemsize
    TB, Bp = _pick_batch_tile(B, D, Cp, batch_tile, out_itemsize)
    if Bp != B:
        x = jnp.pad(x, ((0, Bp - B), (0, 0)))   # only when no exact-divisor tile exists

    kernel = functools.partial(_softmax_regression_kernel, bf16_dot=bf16_dot)

    out = pl.pallas_call(
        kernel,
        out_shape=jax.ShapeDtypeStruct((Bp, Cp), out_dtype),
        grid=(Bp // TB,),
        in_specs=[
            # x: tiled over batch, auto double-buffered by BlockSpec.
            pl.BlockSpec((TB, D), lambda i: (i, 0)),
            # W / bias: constant index_map -> single resident VMEM copy.
            pl.BlockSpec((D, Cp), lambda i: (0, 0), pipeline_mode=pl.Buffered(1)),
            pl.BlockSpec((1, Cp), lambda i: (0, 0), pipeline_mode=pl.Buffered(1)),
        ],
        out_specs=pl.BlockSpec((TB, Cp), lambda i: (i, 0)),
        compiler_params=pltpu.CompilerParams(
            # Batch rows are independent -> shard across TCs on v7x.
            dimension_semantics=("parallel",)),
    )(x, weights, bias2d)

    if Bp != B or Cp != C:
        out = out[:B, :C]   # strip padding only when padding was added
    return out


if __name__ == "__main__":
    # Deterministic synthetic parameters (module __init__: randn(input_dim,
    # num_classes), randn(num_classes)) — small shapes for the smoke test.
    batch, input_dim, num_classes = 8, 32, 16

    key = jax.random.PRNGKey(0)
    kx, kw, kb = jax.random.split(key, 3)
    x = jax.random.normal(kx, (batch, input_dim), dtype=jnp.float32)
    weights = jax.random.normal(kw, (input_dim, num_classes), dtype=jnp.float32)
    bias = jax.random.normal(kb, (num_classes,), dtype=jnp.float32)

    y = softmax_regression(x, weights, bias)
    y = jax.block_until_ready(y)

    # Reference at the same (HIGHEST) matmul precision as the kernel.
    logits_ref = jnp.dot(x, weights, precision=jax.lax.Precision.HIGHEST) + bias
    ref = jax.nn.softmax(logits_ref, axis=-1)

    assert y.shape == (batch, num_classes)
    assert jnp.allclose(y, ref, atol=1e-5, rtol=1e-5), \
        f"max abs err = {float(jnp.max(jnp.abs(y - ref)))}"
    assert jnp.allclose(jnp.sum(y, axis=-1), 1.0, atol=1e-5)

    print("KERNEL_OK")
</pallas_src>

<mosaic_0001>
module attributes {stable_mosaic.version = 11 : i64} {
  func.func @_softmax_regression_kernel(%arg0: i32, %arg1: memref<8x32xf32, #tpu.memory_space<vmem>>, %arg2: memref<32x128xf32, #tpu.memory_space<vmem>>, %arg3: memref<1x128xf32, #tpu.memory_space<vmem>>, %arg4: memref<8x128xf32, #tpu.memory_space<vmem>>) attributes {dimension_semantics = [#tpu.dimension_semantics<parallel>], iteration_bounds = array<i64: 1>, scalar_prefetch = 0 : i64, scratch_operands = 0 : i64, tpu.core_type = #tpu.core_type<tc>, window_params = [{transform_indices = @transform_0, window_bounds = array<i64: 8, 32>}, {pipeline_mode = #tpu.pipeline_mode<synchronous>, transform_indices = @transform_1, window_bounds = array<i64: 32, 128>}, {pipeline_mode = #tpu.pipeline_mode<synchronous>, transform_indices = @transform_2, window_bounds = array<i64: 1, 128>}, {transform_indices = @transform_3, window_bounds = array<i64: 8, 128>}]} {
    %c0 = arith.constant 0 : index
    %c0_0 = arith.constant 0 : index
    %0 = vector.load %arg1[%c0, %c0_0] : memref<8x32xf32, #tpu.memory_space<vmem>>, vector<8x32xf32>
    %c0_1 = arith.constant 0 : index
    %c0_2 = arith.constant 0 : index
    %1 = vector.load %arg2[%c0_1, %c0_2] : memref<32x128xf32, #tpu.memory_space<vmem>>, vector<32x128xf32>
    %cst = arith.constant dense<0.000000e+00> : vector<8x128xf32>
    %2 = tpu.matmul %0, %1, %cst {dimension_numbers = #tpu.dot_dimension_numbers<[1], [0], [0], [1], [0, 0, 1, 1], [], []>, precision = #tpu.contract_precision<fp32>} : vector<8x32xf32>, vector<32x128xf32>, vector<8x128xf32> -> vector<8x128xf32>
    %c0_3 = arith.constant 0 : index
    %c0_4 = arith.constant 0 : index
    %3 = vector.load %arg3[%c0_3, %c0_4] : memref<1x128xf32, #tpu.memory_space<vmem>>, vector<1x128xf32>
    %4 = vector.broadcast %3 : vector<1x128xf32> to vector<8x128xf32>
    %5 = arith.addf %2, %4 : vector<8x128xf32>
    %cst_5 = arith.constant dense<0xFF800000> : vector<8xf32>
    %6 = vector.multi_reduction <maximumf>, %5, %cst_5 [1] : vector<8x128xf32> to vector<8xf32>
    %7 = vector.shape_cast %6 : vector<8xf32> to vector<8x1xf32>
    %8 = vector.broadcast %7 : vector<8x1xf32> to vector<8x128xf32>
    %9 = arith.subf %5, %8 : vector<8x128xf32>
    %10 = math.exp %9 : vector<8x128xf32>
    %cst_6 = arith.constant dense<0.000000e+00> : vector<8xf32>
    %11 = vector.multi_reduction <add>, %10, %cst_6 [1] : vector<8x128xf32> to vector<8xf32>
    %12 = vector.shape_cast %11 : vector<8xf32> to vector<8x1xf32>
    %13 = vector.broadcast %12 : vector<8x1xf32> to vector<8x128xf32>
    %14 = arith.divf %10, %13 : vector<8x128xf32>
    %c0_7 = arith.constant 0 : index
    %c0_8 = arith.constant 0 : index
    %15 = vector.load %arg4[%c0_7, %c0_8] : memref<8x128xf32, #tpu.memory_space<vmem>>, vector<8x128xf32>
    tpu.vector_store %arg4[%c0_7, %c0_8], %14 {strides = array<i32>} : memref<8x128xf32, #tpu.memory_space<vmem>>, vector<8x128xf32>,
    return
  }
  func.func @transform_0(%arg0: i32) -> (i32, i32) {
    %c0_i32 = arith.constant 0 : i32
    %c0_i32_0 = arith.constant 0 : i32
    return %arg0, %c0_i32 : i32, i32
  }
  func.func @transform_1(%arg0: i32) -> (i32, i32) {
    %c0_i32 = arith.constant 0 : i32
    %c0_i32_0 = arith.constant 0 : i32
    %c0_i32_1 = arith.constant 0 : i32
    return %c0_i32, %c0_i32_0 : i32, i32
  }
  func.func @transform_2(%arg0: i32) -> (i32, i32) {
    %c0_i32 = arith.constant 0 : i32
    %c0_i32_0 = arith.constant 0 : i32
    %c0_i32_1 = arith.constant 0 : i32
    return %c0_i32, %c0_i32_0 : i32, i32
  }
  func.func @transform_3(%arg0: i32) -> (i32, i32) {
    %c0_i32 = arith.constant 0 : i32
    %c0_i32_0 = arith.constant 0 : i32
    return %arg0, %c0_i32 : i32, i32
  }
}

</mosaic_0001>

<bundles_post_ra>
// kernel: tpu_custom_call.1
= control target key start
LH: loop header
LB: loop body
LE: loop exit
PB: predicated region body
PF: predicated region fallthrough
CT: control target
= control target key end

     0   :  { %8 = vsyncpa [#allocation3], 0  ;;  %s893_s0 = inlined_call_operand.hbm [shape: f32[8,32], index: 0, kind: input, shape index: {}]   ;;  %s894_s1 = inlined_call_operand.hbm [shape: f32[32,128], index: 1, kind: input, shape index: {}]   ;;  %s895_s2 = inlined_call_operand.vmem [shape: f32[1,128], index: 2, kind: input, shape index: {}]   ;;  %s896_s3 = inlined_call_operand.hbm [shape: f32[8,128], index: 3, kind: output, shape index: {}]  }
   0x1   :  { %9 = vsyncpa [#allocation6], 0 }
   0x2   :  { %10 = vsyncpa [#allocation4], 0  ;;  %s795_s12 = smov [#allocation2]   ;;  %s796_s14 = smov [#allocation5]  }
   0x3   :  { %s17_s13 = sshll.u32 %s795_s12, 4  ;;  %s26_s15 = sshll.u32 %s796_s14, 4  ;;  %s18_s13 = int_to_ptr.vmem [resolvable:$true] %s17_s13  ;;  %s823_s15 = int_to_ptr.vmem [resolvable:$true] %s26_s15 }
   0x4   :  { %s723_s18 = scalar_lea.hbm %s893_s0, 128 }
   0x5   :  { %p724_p0 = scmp.ne.s32.totalorder %s893_s0, %s723_s18  ;;  %p727_p1 = scmp.lt.u32.totalorder %s723_s18, %s893_s0 }
   0x7   :  { %p729_p2 = pnand %p727_p1, %p724_p0 }
   0x9   :  { %732 = shalt.err (!%p729_p2)
}
   0xa   :  { %s733_s23 = scalar_lea.vmem %s18_s13, 128  ;;  %p738_p4 = scmp.lt.s32.totalorder %s18_s13, %s18_s13 }
   0xb   :  { %p734_p3 = scmp.ne.s32.totalorder %s18_s13, %s733_s23  ;;  %p739_p5 = scmp.lt.s32.totalorder %s733_s23, %s733_s23 }
   0xd   :  { %p740_p6 = por %p739_p5, %p738_p4 }
   0xf   :  { %p741_p7 = pnand %p740_p6, %p734_p3 }
  0x11   :  { %744 = shalt.err (!%p741_p7)
}
  0x12   :  { %20 = dma.hbm_to_vmem [thread:$0]  %s893_s0, 128, %s18_s13, [#allocation3]  }
  0x13   :  { %s745_s28 = scalar_lea.hbm %s894_s1, 512 }
  0x14   :  { %p746_p8 = scmp.ne.s32.totalorder %s894_s1, %s745_s28  ;;  %p749_p9 = scmp.lt.u32.totalorder %s745_s28, %s894_s1 }
  0x16   :  { %p751_p10 = pnand %p749_p9, %p746_p8 }
  0x18   :  { %754 = shalt.err (!%p751_p10)
}
  0x19   :  { %s755_s6 = scalar_lea.vmem %s823_s15, 512  ;;  %p760_p12 = scmp.lt.s32.totalorder %s823_s15, %s823_s15 }
  0x1a   :  { %p756_p11 = scmp.ne.s32.totalorder %s823_s15, %s755_s6  ;;  %p761_p13 = scmp.lt.s32.totalorder %s755_s6, %s755_s6 }
  0x1c   :  { %p762_p0 = por %p761_p13, %p760_p12 }
  0x1e   :  { %p763_p1 = pnand %p762_p0, %p756_p11 }
  0x20   :  { %766 = shalt.err (!%p763_p1)
}
  0x21   :  { %s797_s0 = smov 128   ;;  %s798_s7 = smov 8  }
  0x22   :  { %32 = dma.hbm_to_vmem [thread:$0]  %s894_s1, 512, %s823_s15, [#allocation6], %s797_s0, %s797_s0, %s798_s7  }
  0x23   :  { %789 = dma.done.wait [#allocation3], 128  }
  0x24   :  { %790 = vsyncadd [#allocation3], 4294967168 }
  0x25   :  { %791 = dma.done.wait [#allocation6], 512  }
  0x26   :  { %792 = vsyncadd [#allocation6], 4294966784  ;;  %v799_v0 = vmov 0.0|0.0   ;;  %vm800_vm0 = vmmov 0   ;;  %v801_v1 = vmov 0.0   ;;  %vm53_vm1 = vcmask 261120  }
  0x27   :  { %665 = vmatprep.subr.bf16.mxu1 %v799_v0  ;;  %683 = vmatprep.subr.bf16.mxu0 %v799_v0  ;;  %v42_v2 = vld [vmem:[#allocation5] sm:$0xff]  ;;  %v43_v3 = vld [vmem:[#allocation5 + $0x8] sm:$0xff]  ;;  %v44_v4 = vld [vmem:[#allocation5 + $0x10] sm:$0xff]  ;;  %s802_s11 = smov [#allocation7]  }
  0x28   :  { %607 = vmatprep.mubr.msk.f32.mxu1 %vm800_vm0, %v801_v1  ;;  %640 = vmatprep.mubr.msk.f32.mxu0 %vm800_vm0, %v801_v1  ;;  %v58_v5 = vand.u32 4294901760, %v42_v2  ;;  %v61_v6 = vand.u32 4294901760, %v43_v3  ;;  %v45_v7 = vld [vmem:[#allocation5 + $0x18] sm:$0xff]  ;;  %v64_v8 = vand.u32 4294901760, %v44_v4  ;;  %s558_s12 = sshll.u32 %s802_s11, 4  ;;  %s559_s12 = int_to_ptr.vmem [resolvable:$true] %s558_s12 }
  0x29   :  { %v41_v9 = vld [vmem:[#allocation2] sm:$0xff]  ;;  %v67_v10 = vand.u32 4294901760, %v45_v7  ;;  %p772_p3 = scmp.lt.s32.totalorder %s559_s12, %s559_s12 }
  0x2a   :  { %v55_v11 = vsel %vm53_vm1, %v41_v9, 0  ;;  %v666_v12 = vpack.c.bf16 %v61_v6, %v58_v5  ;;  %v138_v13 = vsub.f32 %v42_v2, %v58_v5  ;;  %v145_v14 = vsub.f32 %v43_v3, %v61_v6  ;;  %v568_v41 = vld [vmem:[%s895_s2] ss:$0 sm:$0xff]  ;;  %s767_s2 = scalar_lea.vmem %s559_s12, 128 }
  0x2b   :  { %v152_v15 = vsub.f32 %v44_v4, %v64_v8  ;;  %v159_v16 = vsub.f32 %v45_v7, %v67_v10  ;;  %v126_v17 = vand.u32 4294901760, %v55_v11  ;;  %v669_v18 = vpack.c.bf16 %v67_v10, %v64_v8  ;;  %p768_p2 = scmp.ne.s32.totalorder %s559_s12, %s767_s2  ;;  %p773_p4 = scmp.lt.s32.totalorder %s767_s2, %s767_s2 }
  0x2c   :  { %667 = vmatpush3.bf16.msra.mxu1 %v666_v12  ;;  %685 = vmatpush3.bf16.msra.mxu0 %v666_v12  ;;  %v139_v19 = vand.u32 4294901760, %v138_v13  ;;  %v146_v20 = vand.u32 4294901760, %v145_v14  ;;  %v678_v39 = vpack.c.bf16 %v145_v14, %v138_v13 }
  0x2d   :  { %v153_v21 = vand.u32 4294901760, %v152_v15  ;;  %668 = vmatprep.subr.bf16.mxu1 %v799_v0  ;;  %686 = vmatprep.subr.bf16.mxu0 %v799_v0  ;;  %v127_v22 = vsub.f32 %v55_v11, %v126_v17  ;;  %v160_v23 = vand.u32 4294901760, %v159_v16  ;;  %v681_v40 = vpack.c.bf16 %v159_v16, %v152_v15  ;;  %p774_p5 = por %p773_p4, %p772_p3 }
  0x2e   :  { %v140_v24 = vsub.f32 %v138_v13, %v139_v19  ;;  %v147_v25 = vsub.f32 %v145_v14, %v146_v20  ;;  %v690_v31 = vpack.c.bf16 %v146_v20, %v139_v19 }
  0x2f   :  { %v154_v26 = vsub.f32 %v152_v15, %v153_v21  ;;  %v128_v27 = vand.u32 4294901760, %v127_v22  ;;  %v161_v28 = vsub.f32 %v159_v16, %v160_v23  ;;  %v693_v37 = vpack.c.bf16 %v160_v23, %v153_v21  ;;  %p775_p6 = pnand %p774_p5, %p768_p2 }
  0x30   :  { %670 = vmatpush3.bf16.msra.mxu1 %v669_v18  ;;  %688 = vmatpush3.bf16.msra.mxu0 %v669_v18  ;;  %v141_v29 = vand.u32 4294901760, %v140_v24  ;;  %v148_v30 = vand.u32 4294901760, %v147_v25 }
  0x31   :  { %v129_v32 = vsub.f32 %v127_v22, %v128_v27  ;;  %671 = vmatprep.subr.bf16.mxu1 %v799_v0  ;;  %689 = vmatprep.subr.bf16.mxu0 %v799_v0  ;;  %v155_v34 = vand.u32 4294901760, %v154_v26  ;;  %v162_v35 = vand.u32 4294901760, %v161_v28 }
  0x32   :  { %v672_v33 = vpack.c.bf16 %v148_v30, %v141_v29 }
  0x33   :  { %v130_v36 = vand.u32 4294901760, %v129_v32  ;;  %641 = vmatmul.mubr.f32.vlgmr.msra.gmra.mrb[0].mxu0 %v128_v27  ;;  %v675_v38 = vpack.c.bf16 %v162_v35, %v155_v34 }
  0x34   :  { %691 = vmatpush3.bf16.msra.mxu0 %v690_v31  ;;  %651 = vmatprep.mubr.msk.f32.mxu0 %vm800_vm0, %v801_v1 }
  0x35   :  { %608 = vmatmul.mubr.f32.vlgmr.msra.gmra.mrb[0].mxu1 %v130_v36  ;;  %692 = vmatprep.subr.bf16.mxu0 %v799_v0 }
  0x36   :  { %673 = vmatpush3.bf16.msra.mxu1 %v672_v33  ;;  %618 = vmatprep.mubr.msk.f32.mxu1 %vm800_vm0, %v801_v1 }
  0x37   :  { %674 = vmatprep.subr.bf16.mxu1 %v799_v0 }
  0x38   :  { %694 = vmatpush3.bf16.msra.mxu0 %v693_v37 }
  0x39   :  { %695 = vmatprep.subr.bf16.mxu0 %v799_v0 }
  0x3a   :  { %676 = vmatpush3.bf16.msra.mxu1 %v675_v38 }
  0x3b   :  { %677 = vmatprep.subr.bf16.mxu1 %v799_v0  ;;  %652 = vmatmul.mubr.f32.vlgmr.msra.gmra.mrb[0].mxu0 %v126_v17 }
  0x3c   :  { %697 = vmatpush3.bf16.msra.mxu0 %v666_v12  ;;  %662 = vmatprep.mubr.msk.f32.mxu0 %vm800_vm0, %v801_v1 }
  0x3d   :  { %619 = vmatmul.mubr.f32.vlgmr.msra.gmra.mrb[0].mxu1 %v126_v17  ;;  %698 = vmatprep.subr.bf16.mxu0 %v799_v0 }
  0x3e   :  { %679 = vmatpush3.bf16.msra.mxu1 %v678_v39  ;;  %629 = vmatprep.mubr.msk.f32.mxu1 %vm800_vm0, %v801_v1 }
  0x3f   :  { %680 = vmatprep.subr.bf16.mxu1 %v799_v0 }
  0x40   :  { %700 = vmatpush3.bf16.msra.mxu0 %v669_v18 }
  0x42   :  { %682 = vmatpush3.bf16.msra.mxu1 %v681_v40 }
  0x43   :  { %663 = vmatmul.mubr.f32.vlgmr.msra.gmra.mrb[0].mxu0 %v126_v17 }
  0x45   :  { %630 = vmatmul.mubr.f32.vlgmr.msra.gmra.mrb[0].mxu1 %v127_v22 }
 0x116   :  { %v538_v42 = vpop.f32.mrb[0].mxu0 }
 0x117   :  { %v664_v43 = vpop.f32.mrb[1].mxu0 }
 0x118   :  { %v303_v44 = vpop.f32.mrb[0].mxu1 }
 0x119   :  { %v701_v45 = vadd.f32 %v568_v41, %v303_v44  ;;  %v631_v46 = vpop.f32.mrb[1].mxu1 }
 0x11b   :  { %v702_v47 = vadd.f32 %v701_v45, %v538_v42 }
 0x11d   :  { %542 = vmax.xlane.f32.xlu0 %v702_v47 }
 0x1aa   :  { %v543_v48 = vpop.xlane.xlu0 %542 }
 0x1ab   :  { %v544_v49 = vsub.f32 %v702_v47, %v543_v48 }
 0x1ad   :  { %v545_v50 = vmul.f32 1.442695, %v544_v49 }
 0x1af   :  { %719 = vpow2.f32 %v545_v50 }
 0x1b9   :  { %v720_v51 = vpop.eup %719 }
 0x1ba   :  { %547 = vadd.xlane.f32.xlu0 %v720_v51 }
 0x247   :  { %v548_v52 = vpop.xlane.xlu0 %547 }
 0x248   :  { %721 = vrcp.f32 %v548_v52 }
 0x252   :  { %v722_v53 = vpop.eup %721 }
 0x253   :  { %v550_v54 = vmul.f32 %v722_v53, %v720_v51 }
 0x255   :  { %551 = vst [vmem:[#allocation7] sm:$0xff] %v550_v54 }
 0x256   :  { %778 = shalt.err (!%p775_p6)
}
 0x257   :  { %s779_s15 = scalar_lea.hbm %s896_s3, 128 }
 0x258   :  { %p780_p7 = scmp.ne.s32.totalorder %s896_s3, %s779_s15  ;;  %p783_p8 = scmp.lt.u32.totalorder %s779_s15, %s896_s3 }
 0x25a   :  { %p785_p9 = pnand %p783_p8, %p780_p7 }
 0x25c   :  { %788 = shalt.err (!%p785_p9)
}
 0x25d   :  { %561 = dma.vmem_to_hbm [thread:$0]  %s559_s12, 128, %s896_s3, [#allocation4]  }
 0x25e   :  { %793 = dma.done.wait [#allocation4], 128  }
 0x25f   :  { %794 = vsyncadd [#allocation4], 4294967168 }
 0x260   :  { %565 = vsyncpa [#allocation3], 1 }
 0x261   :  { %566 = vsyncpa [#allocation6], 1 }
 0x262   :  { %567 = vsyncpa [#allocation4], 1 }

</bundles_post_ra>
